<compile_context>
chip_gen: v7x
topology: tpu7x:2x2x1
jax: 0.10.0
libtpu: 0.0.40
codegen_flags: <defaults>
</compile_context>

<pallas_src>
import functools

import jax
import jax.numpy as jnp
from jax.experimental import pallas as pl
from jax.experimental.pallas import tpu as pltpu


def _readout_kernel(x_ref, w_ref, o_ref, acc_ref, *, scale, n_valid, tn, mask_tail):
    # x_ref: (TB, TN, D)   w_ref: (D, D_out)   o_ref: (TB, D_out)
    # acc_ref: f32 VMEM (TB, D) node-axis partial sum, resident across the node grid axis.
    n = pl.program_id(1)

    @pl.when(n == 0)
    def _():
        acc_ref[...] = jnp.zeros_like(acc_ref)

    x = x_ref[...].astype(jnp.float32)                       # (TB, TN, D)
    if mask_tail:
        # Last node tile may extend past the array; OOB reads are garbage -> zero them.
        node_ids = n * tn + jax.lax.broadcasted_iota(jnp.int32, x.shape, 1)
        x = jnp.where(node_ids < n_valid, x, 0.0)
    acc_ref[...] += jnp.sum(x, axis=1)                       # cheap VPU/XLU work

    @pl.when(n == pl.num_programs(1) - 1)
    def _():
        xs = acc_ref[...]                                    # (TB, D) f32
        if scale != 1.0:                                     # mean readout
            xs = xs * scale
        y = jnp.dot(xs.astype(w_ref.dtype), w_ref[...],
                    preferred_element_type=jnp.float32)      # (TB, D_out) on the MXU
        o_ref[...] = y.astype(o_ref.dtype)


def _round_up(x, m):
    return ((x + m - 1) // m) * m


def _sublane(dtype):
    return {4: 8, 2: 16, 1: 32}.get(jnp.dtype(dtype).itemsize, 8)


def readout(x, w_t, method="sum", *, max_block_bytes=None):
    """Pallas implementation of Readout.forward.

    x:   [B, N, D_in]
    w_t: [D_in, D_out]  (nn.Linear weight, transposed ONCE outside the forward)
    returns [B, D_out]
    """
    if method not in ("sum", "mean"):
        raise ValueError(f"unsupported readout method: {method}")

    B, N, D_in = x.shape
    d_in_w, D_out = w_t.shape
    assert d_in_w == D_in

    # ---- lane-density folding: make the streamed feature dim a multiple of 128 -------
    g = 1
    if D_in < 128 and 128 % D_in == 0:
        g_cand = 128 // D_in
        if N % g_cand == 0:
            g = g_cand
    if g > 1:
        x_eff = x.reshape(B, N // g, g * D_in)   # contiguous fold: metadata-only reshape
        w_eff = jnp.tile(w_t, (g, 1))            # tiny: sum of folded groups == tiled W
    else:
        x_eff, w_eff = x, w_t
    Nf, Df = x_eff.shape[1], x_eff.shape[2]

    dsize_x = jnp.dtype(x.dtype).itemsize
    dsize_w = jnp.dtype(w_eff.dtype).itemsize
    sub_x = _sublane(x.dtype)
    sub_o = _sublane(x.dtype)                    # output dtype == x dtype

    # ---- hardware budget (padded-size aware) ------------------------------------------
    try:
        vmem_cap = int(pltpu.get_tpu_info().vmem_capacity_bytes)
    except Exception:
        vmem_cap = 64 << 20                      # conservative (v7x per-TC size)
    vmem_budget = int(0.70 * vmem_cap)

    d_lane = _round_up(Df, 128)
    dout_lane = _round_up(D_out, 128)

    # ---- batch tile: sublane-legal; keep grid[0] >= 2 when B allows (v7x megacore) ----
    if B < 2 * sub_o:
        TB = B                                   # full-extent block (always legal)
    else:
        TB = (_round_up(B, sub_o) // 2) // sub_o * sub_o
        TB = min(128, max(sub_o, TB))
    grid_b = pl.cdiv(B, TB)

    # ---- node tile: biggest padded x block fitting a double-buffered VMEM budget ------
    w_pad = _round_up(Df, _sublane(w_eff.dtype)) * dout_lane * dsize_w
    out_pad = _round_up(TB, sub_o) * dout_lane * dsize_x
    acc_pad = _round_up(TB, 8) * d_lane * 4
    fixed = 2 * w_pad + 2 * out_pad + acc_pad
    if max_block_bytes is None:
        blk_budget = max(1 << 20, (vmem_budget - fixed) // 2)
        blk_target = min(8 << 20, blk_budget)    # big blocks amortize ~0.35us/step
    else:
        blk_target = int(max_block_bytes)        # testing knob
    row_bytes = TB * d_lane * dsize_x            # padded bytes per node row
    tn_target = max(1, blk_target // max(1, row_bytes))
    if Nf <= max(tn_target, sub_x):
        TN = Nf                                  # full extent
    else:
        TN = max(sub_x, (min(tn_target, Nf) // sub_x) * sub_x)
    grid_n = pl.cdiv(Nf, TN)

    x_blk_pad = TB * _round_up(TN, sub_x) * d_lane * dsize_x
    need = 2 * x_blk_pad + fixed
    vmem_limit = int(min(max(int(1.5 * need), 16 << 20), int(0.9 * vmem_cap)))

    scale = 1.0 / float(N) if method == "mean" else 1.0
    kernel = functools.partial(_readout_kernel, scale=scale, n_valid=Nf, tn=TN,
                               mask_tail=(Nf % TN != 0))

    return pl.pallas_call(
        kernel,
        out_shape=jax.ShapeDtypeStruct((B, D_out), x.dtype),
        grid_spec=pltpu.PrefetchScalarGridSpec(
            num_scalar_prefetch=0,
            grid=(grid_b, grid_n),
            in_specs=[
                pl.BlockSpec((TB, TN, Df), lambda b, n: (b, n, 0)),
                pl.BlockSpec((Df, D_out), lambda b, n: (0, 0)),   # resident weight
            ],
            out_specs=pl.BlockSpec((TB, D_out), lambda b, n: (b, 0)),
            scratch_shapes=[pltpu.VMEM((TB, Df), jnp.float32)],
        ),
        compiler_params=pltpu.CompilerParams(
            dimension_semantics=("parallel", "arbitrary"),
            vmem_limit_bytes=vmem_limit,
        ),
    )(x_eff, w_eff)


def init_readout_params(key, in_dim, out_dim):
    """Deterministic synthetic init matching PyTorch's nn.Linear default
    (kaiming-uniform bound = 1/sqrt(in_dim)); weight shape [out_dim, in_dim]."""
    bound = 1.0 / jnp.sqrt(jnp.float32(in_dim))
    return jax.random.uniform(key, (out_dim, in_dim),
                              minval=-bound, maxval=bound, dtype=jnp.float32)


def prepare_readout_weight(weight):
    """One-time transpose to the kernel's [D_in, D_out] layout (not per-forward)."""
    return jnp.asarray(weight).T


if __name__ == "__main__":
    key = jax.random.PRNGKey(0)
    k_x, k_w, k_x2, k_x3 = jax.random.split(key, 4)
    HI = jax.lax.Precision.HIGHEST

    # ---- case 1: small shapes implied by the module ----
    B, N, D_in, D_out = 2, 8, 32, 16
    x = jax.random.normal(k_x, (B, N, D_in), dtype=jnp.float32)
    weight = init_readout_params(k_w, D_in, D_out)          # PyTorch layout [D_out, D_in]
    w_t = prepare_readout_weight(weight)                    # transposed once

    out = jax.block_until_ready(readout(x, w_t, method="sum"))
    ref = jnp.sum(jnp.einsum("bnd,od->bno", x, weight, precision=HI), axis=1)
    assert out.shape == (B, D_out)
    assert jnp.allclose(out, ref, atol=1e-4, rtol=1e-4)

    out_mean = jax.block_until_ready(readout(x, w_t, method="mean"))
    ref_mean = jnp.mean(jnp.einsum("bnd,od->bno", x, weight, precision=HI), axis=1)
    assert jnp.allclose(out_mean, ref_mean, atol=1e-4, rtol=1e-4)

    # ---- case 2: non-divisible B/N with a tiny forced block size -> exercises cdiv
    #      tiling, tail-node masking and OOB batch-tile clipping ----
    B2, N2 = 20, 40
    x2 = jax.random.normal(k_x2, (B2, N2, D_in), dtype=jnp.float32)
    out2 = jax.block_until_ready(
        readout(x2, w_t, method="mean", max_block_bytes=32 * 1024))
    ref2 = jnp.mean(jnp.einsum("bnd,od->bno", x2, weight, precision=HI), axis=1)
    assert jnp.allclose(out2, ref2, atol=1e-3, rtol=1e-3)

    # ---- case 3: shapes where lane-folding doesn't apply (N % (128/D_in) != 0) ----
    B3, N3 = 3, 7
    x3 = jax.random.normal(k_x3, (B3, N3, D_in), dtype=jnp.float32)
    out3 = jax.block_until_ready(readout(x3, w_t, method="sum"))
    ref3 = jnp.sum(jnp.einsum("bnd,od->bno", x3, weight, precision=HI), axis=1)
    assert jnp.allclose(out3, ref3, atol=1e-4, rtol=1e-4)

    print("KERNEL_OK")
</pallas_src>

<mosaic_0001>
module attributes {stable_mosaic.version = 11 : i64} {
  func.func @_readout_kernel(%arg0: i32, %arg1: i32, %arg2: memref<2x2x128xf32, #tpu.memory_space<vmem>>, %arg3: memref<128x16xf32, #tpu.memory_space<vmem>>, %arg4: memref<2x16xf32, #tpu.memory_space<vmem>>, %arg5: memref<2x128xf32, #tpu.memory_space<vmem>>) attributes {dimension_semantics = [#tpu.dimension_semantics<parallel>, #tpu.dimension_semantics<arbitrary>], iteration_bounds = array<i64: 1, 1>, scalar_prefetch = 0 : i64, scratch_operands = 1 : i64, tpu.core_type = #tpu.core_type<tc>, window_params = [{transform_indices = @transform_0, window_bounds = array<i64: 2, 2, 128>}, {pipeline_mode = #tpu.pipeline_mode<synchronous>, transform_indices = @transform_1, window_bounds = array<i64: 128, 16>}, {transform_indices = @transform_2, window_bounds = array<i64: 2, 16>}]} {
    %c0_i32 = arith.constant 0 : i32
    %0 = arith.cmpi eq, %arg1, %c0_i32 : i32
    %1 = arith.extui %0 : i1 to i32
    %c0_i32_0 = arith.constant 0 : i32
    %2 = arith.cmpi ne, %1, %c0_i32_0 : i32
    scf.if %2 {
      %cst_9 = arith.constant 0.000000e+00 : f32
      %11 = vector.broadcast %cst_9 : f32 to vector<2x128xf32>
      %c0_10 = arith.constant 0 : index
      %c0_11 = arith.constant 0 : index
      %12 = vector.load %arg5[%c0_10, %c0_11] : memref<2x128xf32, #tpu.memory_space<vmem>>, vector<2x128xf32>
      tpu.vector_store %arg5[%c0_10, %c0_11], %11 {strides = array<i32>} : memref<2x128xf32, #tpu.memory_space<vmem>>, vector<2x128xf32>,
    } else {
    }
    %c0 = arith.constant 0 : index
    %c0_1 = arith.constant 0 : index
    %c0_2 = arith.constant 0 : index
    %3 = vector.load %arg2[%c0, %c0_1, %c0_2] : memref<2x2x128xf32, #tpu.memory_space<vmem>>, vector<2x2x128xf32>
    %c0_3 = arith.constant 0 : index
    %c0_4 = arith.constant 0 : index
    %4 = vector.load %arg5[%c0_3, %c0_4] : memref<2x128xf32, #tpu.memory_space<vmem>>, vector<2x128xf32>
    %cst = arith.constant dense<0.000000e+00> : vector<2x128xf32>
    %5 = vector.multi_reduction <add>, %3, %cst [1] : vector<2x2x128xf32> to vector<2x128xf32>
    %6 = arith.addf %4, %5 : vector<2x128xf32>
    %c0_5 = arith.constant 0 : index
    %c0_6 = arith.constant 0 : index
    %7 = vector.load %arg5[%c0_5, %c0_6] : memref<2x128xf32, #tpu.memory_space<vmem>>, vector<2x128xf32>
    tpu.vector_store %arg5[%c0_5, %c0_6], %6 {strides = array<i32>} : memref<2x128xf32, #tpu.memory_space<vmem>>, vector<2x128xf32>,
    %c0_i32_7 = arith.constant 0 : i32
    %8 = arith.cmpi eq, %arg1, %c0_i32_7 : i32
    %9 = arith.extui %8 : i1 to i32
    %c0_i32_8 = arith.constant 0 : i32
    %10 = arith.cmpi ne, %9, %c0_i32_8 : i32
    scf.if %10 {
      %c0_9 = arith.constant 0 : index
      %c0_10 = arith.constant 0 : index
      %11 = vector.load %arg5[%c0_9, %c0_10] : memref<2x128xf32, #tpu.memory_space<vmem>>, vector<2x128xf32>
      %c0_11 = arith.constant 0 : index
      %c0_12 = arith.constant 0 : index
      %12 = vector.load %arg3[%c0_11, %c0_12] : memref<128x16xf32, #tpu.memory_space<vmem>>, vector<128x16xf32>
      %cst_13 = arith.constant dense<0.000000e+00> : vector<2x16xf32>
      %13 = tpu.matmul %11, %12, %cst_13 {dimension_numbers = #tpu.dot_dimension_numbers<[1], [0], [0], [1], [0, 0, 1, 1], [], []>} : vector<2x128xf32>, vector<128x16xf32>, vector<2x16xf32> -> vector<2x16xf32>
      %c0_14 = arith.constant 0 : index
      %c0_15 = arith.constant 0 : index
      %14 = vector.load %arg4[%c0_14, %c0_15] : memref<2x16xf32, #tpu.memory_space<vmem>>, vector<2x16xf32>
      tpu.vector_store %arg4[%c0_14, %c0_15], %13 {strides = array<i32>} : memref<2x16xf32, #tpu.memory_space<vmem>>, vector<2x16xf32>,
    } else {
    }
    return
  }
  func.func @transform_0(%arg0: i32, %arg1: i32) -> (i32, i32, i32) {
    %c0_i32 = arith.constant 0 : i32
    %c0_i32_0 = arith.constant 0 : i32
    return %arg0, %arg1, %c0_i32 : i32, i32, i32
  }
  func.func @transform_1(%arg0: i32, %arg1: i32) -> (i32, i32) {
    %c0_i32 = arith.constant 0 : i32
    %c0_i32_0 = arith.constant 0 : i32
    %c0_i32_1 = arith.constant 0 : i32
    return %c0_i32, %c0_i32_0 : i32, i32
  }
  func.func @transform_2(%arg0: i32, %arg1: i32) -> (i32, i32) {
    %c0_i32 = arith.constant 0 : i32
    %c0_i32_0 = arith.constant 0 : i32
    return %arg0, %c0_i32 : i32, i32
  }
}

</mosaic_0001>

<bundles_post_ra>
// kernel: tpu_custom_call.1
= control target key start
LH: loop header
LB: loop body
LE: loop exit
PB: predicated region body
PF: predicated region fallthrough
CT: control target
= control target key end

     0   :  { %v252_v3 = vmov 0.0|0.0   ;;  %v253_v6 = vmov 0.0   ;;  %vm254_vm0 = vmmov 0   ;;  %vm20_vm1 = vcmask 1041408   ;;  %s345_s0 = inlined_call_operand.vmem [shape: f32[2,2,128], index: 0, kind: input, shape index: {}]   ;;  %s346_s1 = inlined_call_operand.vmem [shape: f32[128,16], index: 1, kind: input, shape index: {}]   ;;  %s347_s2 = inlined_call_operand.hbm [shape: f32[2,16], index: 2, kind: output, shape index: {}]  }
   0x1   :  { %v46_v0 = vld [vmem:[%s346_s1] sm:$0xff]  ;;  %v47_v1 = vld [vmem:[%s346_s1 + $0x8] sm:$0xff]  ;;  %v48_v2 = vld [vmem:[%s346_s1 + $0x10] sm:$0xff]  ;;  %200 = vmatprep.subr.bf16.mxu0 %v252_v3  ;;  %16 = vst [vmem:[#allocation2] sm:$0x3] %v253_v6  ;;  %197 = vmatprep.mubr.msk.f32.mxu0 %vm254_vm0, %v253_v6 }
   0x2   :  { %v201_v4 = vpack.c.bf16 %v47_v1, %v46_v0  ;;  %v49_v5 = vld [vmem:[%s346_s1 + $0x18] sm:$0xff]  ;;  %v50_v8 = vld [vmem:[%s346_s1 + $0x20] sm:$0xff]  ;;  %v51_v9 = vld [vmem:[%s346_s1 + $0x28] sm:$0xff] }
   0x3   :  { %v204_v7 = vpack.c.bf16 %v49_v5, %v48_v2  ;;  %v17_v10 = vld [vmem:[%s345_s0] sm:$0x3]  ;;  %v18_v11 = vld [vmem:[%s345_s0 + $0x2] sm:$0x3] }
   0x4   :  { %202 = vmatpush3.bf16.msra.mxu0 %v201_v4  ;;  %v21_v12 = vsel %vm20_vm1, %v17_v10, 0.0  ;;  %v28_v13 = vsel %vm20_vm1, %v18_v11, 0.0 }
   0x5   :  { %203 = vmatprep.subr.bf16.mxu0 %v252_v3 }
   0x6   :  { %7 = vsyncpa [#allocation4], 0  ;;  %v207_v14 = vpack.c.bf16 %v51_v9, %v50_v8  ;;  %v22_v15 = vrot.slane %v21_v12, 4  ;;  %v29_v16 = vrot.slane %v28_v13, 4  ;;  %v52_v17 = vld [vmem:[%s346_s1 + $0x30] sm:$0xff]  ;;  %v53_v18 = vld [vmem:[%s346_s1 + $0x38] sm:$0xff] }
   0x7   :  { %v210_v21 = vpack.c.bf16 %v53_v18, %v52_v17  ;;  %v54_v24 = vld [vmem:[%s346_s1 + $0x40] sm:$0xff]  ;;  %v55_v25 = vld [vmem:[%s346_s1 + $0x48] sm:$0xff]  ;;  %v56_v31 = vld [vmem:[%s346_s1 + $0x50] sm:$0xff]  ;;  %vm37_vm2 = vcmask 1041409   ;;  %s255_s16 = smov [#allocation3]   ;;  %vm132_vm3 = vcmask 123904  }
   0x8   :  { %205 = vmatpush3.bf16.msra.mxu0 %v204_v7  ;;  %v23_v19 = vadd.f32 %v22_v15, %v21_v12  ;;  %v30_v20 = vadd.f32 %v29_v16, %v28_v13  ;;  %v213_v28 = vpack.c.bf16 %v55_v25, %v54_v24  ;;  %v57_v32 = vld [vmem:[%s346_s1 + $0x58] sm:$0xff]  ;;  %v19_v33 = vld [vmem:[#allocation2] sm:$0x3]  ;;  %v59_v39 = vld [vmem:[%s346_s1 + $0x68] sm:$0xff]  ;;  %s140_s17 = sshll.u32 %s255_s16, 4  ;;  %s141_s17 = int_to_ptr.vmem [resolvable:$true] %s140_s17 }
   0x9   :  { %206 = vmatprep.subr.bf16.mxu0 %v252_v3  ;;  %v216_v36 = vpack.c.bf16 %v57_v32, %v56_v31  ;;  %v58_v38 = vld [vmem:[%s346_s1 + $0x60] sm:$0xff]  ;;  %v60_v42 = vld [vmem:[%s346_s1 + $0x70] sm:$0xff]  ;;  %v61_v43 = vld [vmem:[%s346_s1 + $0x78] sm:$0xff]  ;;  %s228_s18 = scalar_lea.vmem %s141_s17, 32  ;;  %p233_p1 = scmp.lt.s32.totalorder %s141_s17, %s141_s17 }
   0xa   :  { %v24_v22 = vrot.slane %v23_v19, 2  ;;  %v31_v23 = vrot.slane %v30_v20, 2  ;;  %v219_v41 = vpack.c.bf16 %v59_v39, %v58_v38  ;;  %v222_v44 = vpack.c.bf16 %v61_v43, %v60_v42  ;;  %p229_p0 = scmp.ne.s32.totalorder %s141_s17, %s228_s18  ;;  %p234_p2 = scmp.lt.s32.totalorder %s228_s18, %s228_s18 }
   0xc   :  { %208 = vmatpush3.bf16.msra.mxu0 %v207_v14  ;;  %v25_v26 = vadd.f32 %v24_v22, %v23_v19  ;;  %v32_v27 = vadd.f32 %v31_v23, %v30_v20  ;;  %p235_p3 = por %p234_p2, %p233_p1 }
   0xd   :  { %209 = vmatprep.subr.bf16.mxu0 %v252_v3 }
   0xe   :  { %v26_v29 = vrot.slane %v25_v26, 1  ;;  %v33_v30 = vrot.slane %v32_v27, 1  ;;  %p236_p4 = pnand %p235_p3, %p229_p0 }
  0x10   :  { %211 = vmatpush3.bf16.msra.mxu0 %v210_v21  ;;  %v27_v34 = vadd.f32 %v26_v29, %v25_v26  ;;  %v34_v35 = vadd.f32 %v33_v30, %v32_v27 }
  0x11   :  { %212 = vmatprep.subr.bf16.mxu0 %v252_v3 }
  0x12   :  { %v38_v37 = vsel %vm37_vm2, %v34_v35, %v27_v34 }
  0x13   :  { %v40_v40 = vadd.f32 %v38_v37, %v19_v33 }
  0x14   :  { %214 = vmatpush3.bf16.msra.mxu0 %v213_v28 }
  0x15   :  { %215 = vmatprep.subr.bf16.mxu0 %v252_v3  ;;  %41 = vst [vmem:[#allocation2] sm:$0x3] %v40_v40 }
  0x18   :  { %217 = vmatpush3.bf16.msra.mxu0 %v216_v36 }
  0x19   :  { %218 = vmatprep.subr.bf16.mxu0 %v252_v3 }
  0x1c   :  { %220 = vmatpush3.bf16.msra.mxu0 %v219_v41  ;;  %v45_v45 = vld [vmem:[#allocation2] sm:$0x3] }
  0x1d   :  { %221 = vmatprep.subr.bf16.mxu0 %v252_v3 }
  0x20   :  { %223 = vmatpush3.bf16.msra.mxu0 %v222_v44 }
  0x23   :  { %198 = vmatmul.mubr.f32.vlgmr.msra.gmra.mrb[0].mxu0 %v45_v45 }
  0xf6   :  { %v128_v46 = vpop.f32.mrb[0].mxu0 }
  0xf7   :  { %133 = vst.msk [vmem:[#allocation3] sm:$0x3] %vm132_vm3, %v128_v46  ;;  %v199_v47 = vpop.f32.mrb[1].mxu0 }
  0xf8   :  { %239 = shalt.err (!%p236_p4)
}
  0xf9   :  { %s240_s20 = scalar_lea.hbm %s347_s2, 32 }
  0xfa   :  { %p241_p5 = scmp.ne.s32.totalorder %s347_s2, %s240_s20  ;;  %p244_p6 = scmp.lt.u32.totalorder %s240_s20, %s347_s2 }
  0xfc   :  { %p246_p7 = pnand %p244_p6, %p241_p5 }
  0xfe   :  { %249 = shalt.err (!%p246_p7)
}
  0xff   :  { %143 = dma.vmem_to_hbm [thread:$0]  %s141_s17, 32, %s347_s2, [#allocation4]  }
 0x100   :  { %250 = dma.done.wait [#allocation4], 32  }
 0x101   :  { %251 = vsyncadd [#allocation4], 4294967264 }
 0x102   :  { %147 = vsyncpa [#allocation4], 1 }

</bundles_post_ra>
